<compile_context>
chip_gen: v5e
topology: v5e:2x2
jax: 0.10.0
libtpu: 0.0.40
codegen_flags: <defaults>
</compile_context>

<pallas_src>
import jax
import jax.numpy as jnp
from jax.experimental import pallas as pl
from jax.experimental.pallas import tpu as pltpu


_PARAM_ORDER = ("w1", "b1", "w2", "b2", "w3", "b3",
                "w4", "b4", "w5", "b5", "w6", "b6")


def _round_up(x, m):
    return ((x + m - 1) // m) * m


def _elu(z):
    # nn.ELU (alpha=1.0) in f32.  The minimum() keeps the discarded branch of
    # the where() from producing inf on large positive z.
    return jnp.where(z > 0.0, z, jnp.exp(jnp.minimum(z, 0.0)) - 1.0)


def autoencoder_kernel(
    x_ref,
    w1_ref, b1_ref, w2_ref, b2_ref, w3_ref, b3_ref,      # encoder
    w4_ref, b4_ref, w5_ref, b5_ref, w6_ref, b6_ref,      # decoder
    recon_ref, h_ref,
):
    def linear(a_bf16, w_ref, b_ref):
        # bf16 operands into the MXU, f32 accumulation, f32 bias add.
        return jnp.dot(a_bf16, w_ref[...],
                       preferred_element_type=jnp.float32) + b_ref[...]

    # x arrives as f32 straight from HBM; cast to bf16 in-register (no
    # separate wrapper-side convert pass over HBM).
    x = x_ref[...].astype(jnp.bfloat16)

    # ---------------- encoder ----------------
    z = _elu(linear(x, w1_ref, b1_ref)).astype(jnp.bfloat16)
    z = _elu(linear(z, w2_ref, b2_ref)).astype(jnp.bfloat16)
    h = linear(z, w3_ref, b3_ref)                        # f32 (tb, hidden_dim)
    h_ref[...] = h.astype(h_ref.dtype)                   # unpadded latent store

    # ---------------- decoder ----------------
    z = _elu(linear(h.astype(jnp.bfloat16), w4_ref, b4_ref)).astype(jnp.bfloat16)
    z = _elu(linear(z, w5_ref, b5_ref)).astype(jnp.bfloat16)
    logits = linear(z, w6_ref, b6_ref)

    # Numerically stable sigmoid: e = exp(-|z|) is in (0, 1], so 1 + e is in
    # (1, 2] and the approx EUP reciprocal never sees inf/NaN.
    e = jnp.exp(-jnp.abs(logits))
    r = pl.reciprocal(1.0 + e, approx=True)
    recon = jnp.where(logits >= 0.0, r, e * r)
    recon_ref[...] = recon.astype(recon_ref.dtype)       # bf16 store (half traffic)


def prepare_params(params):
    """One-time parameter prep (hoisted out of the per-call forward):
    weights -> bf16 MXU operands, biases -> f32 (added after f32 accum)."""
    return tuple(
        params[n].astype(jnp.bfloat16) if n.startswith("w")
        else params[n].astype(jnp.float32)
        for n in _PARAM_ORDER)


def _pick_batch_tile(B, batch_tile):
    # Small batches: a single full-array tile (sublane dim == array dim is
    # always a legal block shape, and there is zero padded/wasted work).
    if B <= 256:
        return B
    # Larger batches: large MXU/lane-aligned tiles, but capped at ~B/2 so the
    # grid has at least two steps (v7x: both TensorCores get work).  Ragged
    # tails are handled by the cdiv grid: out-of-bounds rows of the last
    # block are masked and never written back.
    tb = min(batch_tile, _round_up(pl.cdiv(B, 2), 256))
    return max(256, _round_up(tb, 256))


def autoencoder_forward(x, prepared, *, batch_tile=2048):
    """Fused encoder+decoder forward pass in one Pallas kernel.

    x: (B, input_dim) float32
    prepared: tuple from prepare_params() (bf16 weights, f32 biases)
    returns (reconstruction (B, output_dim) bf16, latent (B, hidden_dim) f32)
    """
    B, input_dim = x.shape
    hidden_dim = prepared[_PARAM_ORDER.index("w3")].shape[1]
    output_dim = prepared[_PARAM_ORDER.index("w6")].shape[1]

    tb = _pick_batch_tile(B, batch_tile)
    grid = (pl.cdiv(B, tb),)

    def resident(arr):
        # Grid-invariant block: stays resident in VMEM, no per-step re-DMA.
        return pl.BlockSpec(arr.shape, lambda i: (0, 0))

    in_specs = [pl.BlockSpec((tb, input_dim), lambda i: (i, 0))]
    in_specs += [resident(a) for a in prepared]

    out_specs = [
        pl.BlockSpec((tb, output_dim), lambda i: (i, 0)),
        pl.BlockSpec((tb, hidden_dim), lambda i: (i, 0)),
    ]
    out_shape = (
        jax.ShapeDtypeStruct((B, output_dim), jnp.bfloat16),  # halved recon bytes
        jax.ShapeDtypeStruct((B, hidden_dim), jnp.float32),   # unpadded latent
    )

    recon, h = pl.pallas_call(
        autoencoder_kernel,
        grid=grid,
        in_specs=in_specs,
        out_specs=out_specs,
        out_shape=out_shape,
        compiler_params=pltpu.CompilerParams(
            dimension_semantics=("parallel",),
            vmem_limit_bytes=32 * 1024 * 1024),
    )(x, *prepared)

    return recon, h


def init_params(key, input_dim, output_dim, hidden_dim):
    """Deterministic PyTorch-style init: U(-1/sqrt(fan_in), 1/sqrt(fan_in))."""
    dims = [
        ("w1", "b1", input_dim, 128),   # encoder Linear(input_dim, 128)
        ("w2", "b2", 128, 64),          # encoder Linear(128, 64)
        ("w3", "b3", 64, hidden_dim),   # encoder Linear(64, hidden_dim)
        ("w4", "b4", hidden_dim, 64),   # decoder Linear(hidden_dim, 64)
        ("w5", "b5", 64, 128),          # decoder Linear(64, 128)
        ("w6", "b6", 128, output_dim),  # decoder Linear(128, output_dim)
    ]
    params = {}
    for wn, bn, fan_in, fan_out in dims:
        key, kw, kb = jax.random.split(key, 3)
        bound = 1.0 / jnp.sqrt(jnp.float32(fan_in))
        params[wn] = jax.random.uniform(
            kw, (fan_in, fan_out), jnp.float32, -bound, bound)
        params[bn] = jax.random.uniform(
            kb, (1, fan_out), jnp.float32, -bound, bound)
    return params


def reference_forward(x, params):
    """Pure-JAX reference with the same bf16-operand / f32-accum numerics."""
    def elu(z):
        return jnp.where(z > 0.0, z, jnp.exp(jnp.minimum(z, 0.0)) - 1.0)

    def lin(a, w, b):
        return jnp.dot(a.astype(jnp.bfloat16), w.astype(jnp.bfloat16),
                       preferred_element_type=jnp.float32) + b

    z = elu(lin(x, params["w1"], params["b1"]))
    z = elu(lin(z, params["w2"], params["b2"]))
    h = lin(z, params["w3"], params["b3"])
    z = elu(lin(h, params["w4"], params["b4"]))
    z = elu(lin(z, params["w5"], params["b5"]))
    recon = jax.nn.sigmoid(lin(z, params["w6"], params["b6"]))
    return recon, h


if __name__ == "__main__":
    # Small, MNIST-like but shrunken shapes: 16x16 "images" flattened.
    batch = 8
    input_dim = 256     # 16*16
    output_dim = 256
    hidden_dim = 32

    key = jax.random.PRNGKey(0)
    key, kx = jax.random.split(key)
    x = jax.random.uniform(kx, (batch, input_dim), jnp.float32)

    params = init_params(key, input_dim, output_dim, hidden_dim)
    prepared = prepare_params(params)        # one-time cast, not per call

    fwd = jax.jit(autoencoder_forward)
    recon, h = fwd(x, prepared)
    recon = jax.block_until_ready(recon)
    h = jax.block_until_ready(h)

    recon_ref, h_ref = reference_forward(x, params)
    assert recon.shape == (batch, output_dim) and recon.dtype == jnp.bfloat16
    assert h.shape == (batch, hidden_dim) and h.dtype == jnp.float32
    recon_f32 = recon.astype(jnp.float32)
    # bf16 operands + bf16 recon store + approx-reciprocal sigmoid -> loose tol.
    assert jnp.allclose(recon_f32, recon_ref, atol=2e-2, rtol=2e-2), \
        float(jnp.max(jnp.abs(recon_f32 - recon_ref)))
    assert jnp.allclose(h, h_ref, atol=1e-2, rtol=1e-2), \
        float(jnp.max(jnp.abs(h - h_ref)))

    print("KERNEL_OK")
</pallas_src>

<mosaic_0001>
module attributes {stable_mosaic.version = 11 : i64} {
  func.func @autoencoder_kernel(%arg0: i32, %arg1: memref<8x256xf32, #tpu.memory_space<vmem>>, %arg2: memref<256x128xbf16, #tpu.memory_space<vmem>>, %arg3: memref<1x128xf32, #tpu.memory_space<vmem>>, %arg4: memref<128x64xbf16, #tpu.memory_space<vmem>>, %arg5: memref<1x64xf32, #tpu.memory_space<vmem>>, %arg6: memref<64x32xbf16, #tpu.memory_space<vmem>>, %arg7: memref<1x32xf32, #tpu.memory_space<vmem>>, %arg8: memref<32x64xbf16, #tpu.memory_space<vmem>>, %arg9: memref<1x64xf32, #tpu.memory_space<vmem>>, %arg10: memref<64x128xbf16, #tpu.memory_space<vmem>>, %arg11: memref<1x128xf32, #tpu.memory_space<vmem>>, %arg12: memref<128x256xbf16, #tpu.memory_space<vmem>>, %arg13: memref<1x256xf32, #tpu.memory_space<vmem>>, %arg14: memref<8x256xbf16, #tpu.memory_space<vmem>>, %arg15: memref<8x32xf32, #tpu.memory_space<vmem>>) attributes {dimension_semantics = [#tpu.dimension_semantics<parallel>], iteration_bounds = array<i64: 1>, scalar_prefetch = 0 : i64, scratch_operands = 0 : i64, tpu.core_type = #tpu.core_type<tc>, window_params = [{transform_indices = @transform_0, window_bounds = array<i64: 8, 256>}, {pipeline_mode = #tpu.pipeline_mode<synchronous>, transform_indices = @transform_1, window_bounds = array<i64: 256, 128>}, {pipeline_mode = #tpu.pipeline_mode<synchronous>, transform_indices = @transform_2, window_bounds = array<i64: 1, 128>}, {pipeline_mode = #tpu.pipeline_mode<synchronous>, transform_indices = @transform_3, window_bounds = array<i64: 128, 64>}, {pipeline_mode = #tpu.pipeline_mode<synchronous>, transform_indices = @transform_4, window_bounds = array<i64: 1, 64>}, {pipeline_mode = #tpu.pipeline_mode<synchronous>, transform_indices = @transform_5, window_bounds = array<i64: 64, 32>}, {pipeline_mode = #tpu.pipeline_mode<synchronous>, transform_indices = @transform_6, window_bounds = array<i64: 1, 32>}, {pipeline_mode = #tpu.pipeline_mode<synchronous>, transform_indices = @transform_7, window_bounds = array<i64: 32, 64>}, {pipeline_mode = #tpu.pipeline_mode<synchronous>, transform_indices = @transform_8, window_bounds = array<i64: 1, 64>}, {pipeline_mode = #tpu.pipeline_mode<synchronous>, transform_indices = @transform_9, window_bounds = array<i64: 64, 128>}, {pipeline_mode = #tpu.pipeline_mode<synchronous>, transform_indices = @transform_10, window_bounds = array<i64: 1, 128>}, {pipeline_mode = #tpu.pipeline_mode<synchronous>, transform_indices = @transform_11, window_bounds = array<i64: 128, 256>}, {pipeline_mode = #tpu.pipeline_mode<synchronous>, transform_indices = @transform_12, window_bounds = array<i64: 1, 256>}, {transform_indices = @transform_13, window_bounds = array<i64: 8, 256>}, {transform_indices = @transform_14, window_bounds = array<i64: 8, 32>}]} {
    %c0 = arith.constant 0 : index
    %c0_0 = arith.constant 0 : index
    %0 = vector.load %arg1[%c0, %c0_0] : memref<8x256xf32, #tpu.memory_space<vmem>>, vector<8x256xf32>
    %1 = arith.truncf %0 : vector<8x256xf32> to vector<8x256xbf16>
    %c0_1 = arith.constant 0 : index
    %c0_2 = arith.constant 0 : index
    %2 = vector.load %arg2[%c0_1, %c0_2] : memref<256x128xbf16, #tpu.memory_space<vmem>>, vector<256x128xbf16>
    %cst = arith.constant dense<0.000000e+00> : vector<8x128xf32>
    %3 = tpu.matmul %1, %2, %cst {dimension_numbers = #tpu.dot_dimension_numbers<[1], [0], [0], [1], [0, 0, 1, 1], [], []>} : vector<8x256xbf16>, vector<256x128xbf16>, vector<8x128xf32> -> vector<8x128xf32>
    %c0_3 = arith.constant 0 : index
    %c0_4 = arith.constant 0 : index
    %4 = vector.load %arg3[%c0_3, %c0_4] : memref<1x128xf32, #tpu.memory_space<vmem>>, vector<1x128xf32>
    %5 = vector.broadcast %4 : vector<1x128xf32> to vector<8x128xf32>
    %6 = arith.addf %3, %5 : vector<8x128xf32>
    %cst_5 = arith.constant 0.000000e+00 : f32
    %7 = vector.broadcast %cst_5 : f32 to vector<8x128xf32>
    %8 = arith.cmpf ogt, %6, %7 : vector<8x128xf32>
    %cst_6 = arith.constant 0.000000e+00 : f32
    %9 = vector.broadcast %cst_6 : f32 to vector<8x128xf32>
    %10 = arith.minimumf %6, %9 : vector<8x128xf32>
    %11 = math.exp %10 : vector<8x128xf32>
    %cst_7 = arith.constant 1.000000e+00 : f32
    %12 = vector.broadcast %cst_7 : f32 to vector<8x128xf32>
    %13 = arith.subf %11, %12 : vector<8x128xf32>
    %14 = arith.select %8, %6, %13 : vector<8x128xi1>, vector<8x128xf32>
    %15 = arith.truncf %14 : vector<8x128xf32> to vector<8x128xbf16>
    %c0_8 = arith.constant 0 : index
    %c0_9 = arith.constant 0 : index
    %16 = vector.load %arg4[%c0_8, %c0_9] : memref<128x64xbf16, #tpu.memory_space<vmem>>, vector<128x64xbf16>
    %cst_10 = arith.constant dense<0.000000e+00> : vector<8x64xf32>
    %17 = tpu.matmul %15, %16, %cst_10 {dimension_numbers = #tpu.dot_dimension_numbers<[1], [0], [0], [1], [0, 0, 1, 1], [], []>} : vector<8x128xbf16>, vector<128x64xbf16>, vector<8x64xf32> -> vector<8x64xf32>
    %c0_11 = arith.constant 0 : index
    %c0_12 = arith.constant 0 : index
    %18 = vector.load %arg5[%c0_11, %c0_12] : memref<1x64xf32, #tpu.memory_space<vmem>>, vector<1x64xf32>
    %19 = vector.broadcast %18 : vector<1x64xf32> to vector<8x64xf32>
    %20 = arith.addf %17, %19 : vector<8x64xf32>
    %cst_13 = arith.constant 0.000000e+00 : f32
    %21 = vector.broadcast %cst_13 : f32 to vector<8x64xf32>
    %22 = arith.cmpf ogt, %20, %21 : vector<8x64xf32>
    %cst_14 = arith.constant 0.000000e+00 : f32
    %23 = vector.broadcast %cst_14 : f32 to vector<8x64xf32>
    %24 = arith.minimumf %20, %23 : vector<8x64xf32>
    %25 = math.exp %24 : vector<8x64xf32>
    %cst_15 = arith.constant 1.000000e+00 : f32
    %26 = vector.broadcast %cst_15 : f32 to vector<8x64xf32>
    %27 = arith.subf %25, %26 : vector<8x64xf32>
    %28 = arith.select %22, %20, %27 : vector<8x64xi1>, vector<8x64xf32>
    %29 = arith.truncf %28 : vector<8x64xf32> to vector<8x64xbf16>
    %c0_16 = arith.constant 0 : index
    %c0_17 = arith.constant 0 : index
    %30 = vector.load %arg6[%c0_16, %c0_17] : memref<64x32xbf16, #tpu.memory_space<vmem>>, vector<64x32xbf16>
    %cst_18 = arith.constant dense<0.000000e+00> : vector<8x32xf32>
    %31 = tpu.matmul %29, %30, %cst_18 {dimension_numbers = #tpu.dot_dimension_numbers<[1], [0], [0], [1], [0, 0, 1, 1], [], []>} : vector<8x64xbf16>, vector<64x32xbf16>, vector<8x32xf32> -> vector<8x32xf32>
    %c0_19 = arith.constant 0 : index
    %c0_20 = arith.constant 0 : index
    %32 = vector.load %arg7[%c0_19, %c0_20] : memref<1x32xf32, #tpu.memory_space<vmem>>, vector<1x32xf32>
    %33 = vector.broadcast %32 : vector<1x32xf32> to vector<8x32xf32>
    %34 = arith.addf %31, %33 : vector<8x32xf32>
    %c0_21 = arith.constant 0 : index
    %c0_22 = arith.constant 0 : index
    %35 = vector.load %arg15[%c0_21, %c0_22] : memref<8x32xf32, #tpu.memory_space<vmem>>, vector<8x32xf32>
    tpu.vector_store %arg15[%c0_21, %c0_22], %34 {strides = array<i32>} : memref<8x32xf32, #tpu.memory_space<vmem>>, vector<8x32xf32>,
    %36 = arith.truncf %34 : vector<8x32xf32> to vector<8x32xbf16>
    %c0_23 = arith.constant 0 : index
    %c0_24 = arith.constant 0 : index
    %37 = vector.load %arg8[%c0_23, %c0_24] : memref<32x64xbf16, #tpu.memory_space<vmem>>, vector<32x64xbf16>
    %cst_25 = arith.constant dense<0.000000e+00> : vector<8x64xf32>
    %38 = tpu.matmul %36, %37, %cst_25 {dimension_numbers = #tpu.dot_dimension_numbers<[1], [0], [0], [1], [0, 0, 1, 1], [], []>} : vector<8x32xbf16>, vector<32x64xbf16>, vector<8x64xf32> -> vector<8x64xf32>
    %c0_26 = arith.constant 0 : index
    %c0_27 = arith.constant 0 : index
    %39 = vector.load %arg9[%c0_26, %c0_27] : memref<1x64xf32, #tpu.memory_space<vmem>>, vector<1x64xf32>
    %40 = vector.broadcast %39 : vector<1x64xf32> to vector<8x64xf32>
    %41 = arith.addf %38, %40 : vector<8x64xf32>
    %cst_28 = arith.constant 0.000000e+00 : f32
    %42 = vector.broadcast %cst_28 : f32 to vector<8x64xf32>
    %43 = arith.cmpf ogt, %41, %42 : vector<8x64xf32>
    %cst_29 = arith.constant 0.000000e+00 : f32
    %44 = vector.broadcast %cst_29 : f32 to vector<8x64xf32>
    %45 = arith.minimumf %41, %44 : vector<8x64xf32>
    %46 = math.exp %45 : vector<8x64xf32>
    %cst_30 = arith.constant 1.000000e+00 : f32
    %47 = vector.broadcast %cst_30 : f32 to vector<8x64xf32>
    %48 = arith.subf %46, %47 : vector<8x64xf32>
    %49 = arith.select %43, %41, %48 : vector<8x64xi1>, vector<8x64xf32>
    %50 = arith.truncf %49 : vector<8x64xf32> to vector<8x64xbf16>
    %c0_31 = arith.constant 0 : index
    %c0_32 = arith.constant 0 : index
    %51 = vector.load %arg10[%c0_31, %c0_32] : memref<64x128xbf16, #tpu.memory_space<vmem>>, vector<64x128xbf16>
    %cst_33 = arith.constant dense<0.000000e+00> : vector<8x128xf32>
    %52 = tpu.matmul %50, %51, %cst_33 {dimension_numbers = #tpu.dot_dimension_numbers<[1], [0], [0], [1], [0, 0, 1, 1], [], []>} : vector<8x64xbf16>, vector<64x128xbf16>, vector<8x128xf32> -> vector<8x128xf32>
    %c0_34 = arith.constant 0 : index
    %c0_35 = arith.constant 0 : index
    %53 = vector.load %arg11[%c0_34, %c0_35] : memref<1x128xf32, #tpu.memory_space<vmem>>, vector<1x128xf32>
    %54 = vector.broadcast %53 : vector<1x128xf32> to vector<8x128xf32>
    %55 = arith.addf %52, %54 : vector<8x128xf32>
    %cst_36 = arith.constant 0.000000e+00 : f32
    %56 = vector.broadcast %cst_36 : f32 to vector<8x128xf32>
    %57 = arith.cmpf ogt, %55, %56 : vector<8x128xf32>
    %cst_37 = arith.constant 0.000000e+00 : f32
    %58 = vector.broadcast %cst_37 : f32 to vector<8x128xf32>
    %59 = arith.minimumf %55, %58 : vector<8x128xf32>
    %60 = math.exp %59 : vector<8x128xf32>
    %cst_38 = arith.constant 1.000000e+00 : f32
    %61 = vector.broadcast %cst_38 : f32 to vector<8x128xf32>
    %62 = arith.subf %60, %61 : vector<8x128xf32>
    %63 = arith.select %57, %55, %62 : vector<8x128xi1>, vector<8x128xf32>
    %64 = arith.truncf %63 : vector<8x128xf32> to vector<8x128xbf16>
    %c0_39 = arith.constant 0 : index
    %c0_40 = arith.constant 0 : index
    %65 = vector.load %arg12[%c0_39, %c0_40] : memref<128x256xbf16, #tpu.memory_space<vmem>>, vector<128x256xbf16>
    %cst_41 = arith.constant dense<0.000000e+00> : vector<8x256xf32>
    %66 = tpu.matmul %64, %65, %cst_41 {dimension_numbers = #tpu.dot_dimension_numbers<[1], [0], [0], [1], [0, 0, 1, 1], [], []>} : vector<8x128xbf16>, vector<128x256xbf16>, vector<8x256xf32> -> vector<8x256xf32>
    %c0_42 = arith.constant 0 : index
    %c0_43 = arith.constant 0 : index
    %67 = vector.load %arg13[%c0_42, %c0_43] : memref<1x256xf32, #tpu.memory_space<vmem>>, vector<1x256xf32>
    %68 = vector.broadcast %67 : vector<1x256xf32> to vector<8x256xf32>
    %69 = arith.addf %66, %68 : vector<8x256xf32>
    %70 = math.absf %69 : vector<8x256xf32>
    %cst_44 = arith.constant 0.000000e+00 : f32
    %71 = vector.broadcast %cst_44 : f32 to vector<8x256xf32>
    %72 = arith.subf %71, %70 : vector<8x256xf32>
    %73 = math.exp %72 : vector<8x256xf32>
    %cst_45 = arith.constant 1.000000e+00 : f32
    %74 = vector.broadcast %cst_45 : f32 to vector<8x256xf32>
    %75 = arith.addf %74, %73 : vector<8x256xf32>
    %76 = tpu.reciprocal %75 {approx = true} : vector<8x256xf32> -> vector<8x256xf32>
    %cst_46 = arith.constant 0.000000e+00 : f32
    %77 = vector.broadcast %cst_46 : f32 to vector<8x256xf32>
    %78 = arith.cmpf oge, %69, %77 : vector<8x256xf32>
    %79 = arith.mulf %73, %76 : vector<8x256xf32>
    %80 = arith.select %78, %76, %79 : vector<8x256xi1>, vector<8x256xf32>
    %81 = arith.truncf %80 : vector<8x256xf32> to vector<8x256xbf16>
    %c0_47 = arith.constant 0 : index
    %c0_48 = arith.constant 0 : index
    %82 = vector.load %arg14[%c0_47, %c0_48] : memref<8x256xbf16, #tpu.memory_space<vmem>>, vector<8x256xbf16>
    tpu.vector_store %arg14[%c0_47, %c0_48], %81 {strides = array<i32>} : memref<8x256xbf16, #tpu.memory_space<vmem>>, vector<8x256xbf16>,
    return
  }
  func.func @transform_0(%arg0: i32) -> (i32, i32) {
    %c0_i32 = arith.constant 0 : i32
    %c0_i32_0 = arith.constant 0 : i32
    return %arg0, %c0_i32 : i32, i32
  }
  func.func @transform_1(%arg0: i32) -> (i32, i32) {
    %c0_i32 = arith.constant 0 : i32
    %c0_i32_0 = arith.constant 0 : i32
    %c0_i32_1 = arith.constant 0 : i32
    return %c0_i32, %c0_i32_0 : i32, i32
  }
  func.func @transform_2(%arg0: i32) -> (i32, i32) {
    %c0_i32 = arith.constant 0 : i32
    %c0_i32_0 = arith.constant 0 : i32
    %c0_i32_1 = arith.constant 0 : i32
    return %c0_i32, %c0_i32_0 : i32, i32
  }
  func.func @transform_3(%arg0: i32) -> (i32, i32) {
    %c0_i32 = arith.constant 0 : i32
    %c0_i32_0 = arith.constant 0 : i32
    %c0_i32_1 = arith.constant 0 : i32
    return %c0_i32, %c0_i32_0 : i32, i32
  }
  func.func @transform_4(%arg0: i32) -> (i32, i32) {
    %c0_i32 = arith.constant 0 : i32
    %c0_i32_0 = arith.constant 0 : i32
    %c0_i32_1 = arith.constant 0 : i32
    return %c0_i32, %c0_i32_0 : i32, i32
  }
  func.func @transform_5(%arg0: i32) -> (i32, i32) {
    %c0_i32 = arith.constant 0 : i32
    %c0_i32_0 = arith.constant 0 : i32
    %c0_i32_1 = arith.constant 0 : i32
    return %c0_i32, %c0_i32_0 : i32, i32
  }
  func.func @transform_6(%arg0: i32) -> (i32, i32) {
    %c0_i32 = arith.constant 0 : i32
    %c0_i32_0 = arith.constant 0 : i32
    %c0_i32_1 = arith.constant 0 : i32
    return %c0_i32, %c0_i32_0 : i32, i32
  }
  func.func @transform_7(%arg0: i32) -> (i32, i32) {
    %c0_i32 = arith.constant 0 : i32
    %c0_i32_0 = arith.constant 0 : i32
    %c0_i32_1 = arith.constant 0 : i32
    return %c0_i32, %c0_i32_0 : i32, i32
  }
  func.func @transform_8(%arg0: i32) -> (i32, i32) {
    %c0_i32 = arith.constant 0 : i32
    %c0_i32_0 = arith.constant 0 : i32
    %c0_i32_1 = arith.constant 0 : i32
    return %c0_i32, %c0_i32_0 : i32, i32
  }
  func.func @transform_9(%arg0: i32) -> (i32, i32) {
    %c0_i32 = arith.constant 0 : i32
    %c0_i32_0 = arith.constant 0 : i32
    %c0_i32_1 = arith.constant 0 : i32
    return %c0_i32, %c0_i32_0 : i32, i32
  }
  func.func @transform_10(%arg0: i32) -> (i32, i32) {
    %c0_i32 = arith.constant 0 : i32
    %c0_i32_0 = arith.constant 0 : i32
    %c0_i32_1 = arith.constant 0 : i32
    return %c0_i32, %c0_i32_0 : i32, i32
  }
  func.func @transform_11(%arg0: i32) -> (i32, i32) {
    %c0_i32 = arith.constant 0 : i32
    %c0_i32_0 = arith.constant 0 : i32
    %c0_i32_1 = arith.constant 0 : i32
    return %c0_i32, %c0_i32_0 : i32, i32
  }
  func.func @transform_12(%arg0: i32) -> (i32, i32) {
    %c0_i32 = arith.constant 0 : i32
    %c0_i32_0 = arith.constant 0 : i32
    %c0_i32_1 = arith.constant 0 : i32
    return %c0_i32, %c0_i32_0 : i32, i32
  }
  func.func @transform_13(%arg0: i32) -> (i32, i32) {
    %c0_i32 = arith.constant 0 : i32
    %c0_i32_0 = arith.constant 0 : i32
    return %arg0, %c0_i32 : i32, i32
  }
  func.func @transform_14(%arg0: i32) -> (i32, i32) {
    %c0_i32 = arith.constant 0 : i32
    %c0_i32_0 = arith.constant 0 : i32
    return %arg0, %c0_i32 : i32, i32
  }
}

</mosaic_0001>

<bundles_post_ra>
// kernel: autoencoder_forward.1
= control target key start
LH: loop header
LB: loop body
LE: loop exit
PB: predicated region body
PF: predicated region fallthrough
CT: control target
= control target key end

     0   :  { %20 = vsyncpa [#allocation3], 0  ;;  %s1243_s0 = inlined_call_operand.vmem [shape: f32[8,256], index: 0, kind: input, shape index: {}]   ;;  %s1244_s1 = inlined_call_operand.hbm [shape: bf16[256,128], index: 1, kind: input, shape index: {}]   ;;  %s1245_s2 = inlined_call_operand.vmem [shape: f32[1,128], index: 2, kind: input, shape index: {}]   ;;  %s1246_s3 = inlined_call_operand.vmem [shape: bf16[128,64], index: 3, kind: input, shape index: {}]   ;;  %s1247_s4 = inlined_call_operand.vmem [shape: f32[1,64], index: 4, kind: input, shape index: {}]   ;;  %s1248_s5 = inlined_call_operand.vmem [shape: bf16[64,32], index: 5, kind: input, shape index: {}]   ;;  %s1249_s6 = inlined_call_operand.vmem [shape: f32[1,32], index: 6, kind: input, shape index: {}]   ;;  %s1250_s7 = inlined_call_operand.vmem [shape: bf16[32,64], index: 7, kind: input, shape index: {}]   ;;  %s1251_s8 = inlined_call_operand.vmem [shape: f32[1,64], index: 8, kind: input, shape index: {}]   ;;  %s1252_s9 = inlined_call_operand.vmem [shape: bf16[64,128], index: 9, kind: input, shape index: {}]   ;;  %s1253_s10 = inlined_call_operand.vmem [shape: f32[1,128], index: 10, kind: input, shape index: {}]   ;;  %s1254_s11 = inlined_call_operand.hbm [shape: bf16[128,256], index: 11, kind: input, shape index: {}]   ;;  %s1255_s12 = inlined_call_operand.vmem [shape: f32[1,256], index: 12, kind: input, shape index: {}]   ;;  %s1256_s13 = inlined_call_operand.hbm [shape: bf16[8,256], index: 13, kind: output, shape index: {0}]   ;;  %s1257_s14 = inlined_call_operand.hbm [shape: f32[8,32], index: 14, kind: output, shape index: {1}]  }
   0x1   :  { %21 = vsyncpa [#allocation6], 0 }
   0x2   :  { %22 = vsyncpa [#allocation4], 0 }
   0x3   :  { %23 = vsyncpa [#allocation9], 0  ;;  %s30_s15 = sshll.u32 %s1244_s1, 4  ;;  %s1068_s16 = smov [#allocation2]   ;;  %s31_s15 = int_to_ptr.hbm [resolvable:$true] %s30_s15 }
   0x4   :  { %s32_s17 = sshll.u32 %s1068_s16, 4  ;;  %s61_s20 = sshll.u32 %s1254_s11, 4  ;;  %s33_s17 = int_to_ptr.vmem [resolvable:$true] %s32_s17  ;;  %s62_s20 = int_to_ptr.hbm [resolvable:$true] %s61_s20 }
   0x5   :  { %s1069_s21 = smov 64   ;;  %s1070_s22 = smov 4  }
   0x6   :  { %38 = dma.hbm_to_vmem [thread:$0]  %s31_s15, 2048, %s33_s17, [#allocation3], %s1069_s21, %s1069_s21, %s1070_s22  }
   0x7   :  { %s1071_s23 = smov [#allocation5]   ;;  %s1072_s25 = smov 128  }
   0x8   :  { %s63_s24 = sshll.u32 %s1071_s23, 4  ;;  %s1073_s26 = smov 8   ;;  %s64_s24 = int_to_ptr.vmem [resolvable:$true] %s63_s24 }
   0x9   :  { %69 = dma.hbm_to_vmem [thread:$0]  %s62_s20, 2048, %s64_s24, [#allocation6], %s1072_s25, %s1072_s25, %s1073_s26  }
   0xa   :  { %1060 = dma.done.wait [#allocation3], 2048  }
   0xb   :  { %1061 = vsyncadd [#allocation3], 4294965248 }
   0xc   :  { %1062 = dma.done.wait [#allocation6], 2048  }
   0xd   :  { %1063 = vsyncadd [#allocation6], 4294965248  ;;  %v892_v0 = vld [vmem:[#allocation2 + $0x38] sm:$0xff]  ;;  %v891_v2 = vld [vmem:[#allocation2 + $0x30] sm:$0xff]  ;;  %vm374_vm2 = vcmask 523264   ;;  %vm391_vm3 = vcmask 261120  }
   0xe   :  { %v900_v1 = vld [vmem:[#allocation2 + $0x78] sm:$0xff]  ;;  %217 = vmatpush.bf16.msra.mxu0 %v892_v0  ;;  %v899_v3 = vld [vmem:[#allocation2 + $0x70] sm:$0xff]  ;;  %v890_v4 = vld [vmem:[#allocation2 + $0x28] sm:$0xff]  ;;  %s1074_s28 = smov [#allocation8]   ;;  %s662_s15 = sshll.u32 %s1257_s14, 4  ;;  %s663_s15 = int_to_ptr.hbm [resolvable:$true] %s662_s15 }
   0xf   :  { %230 = vmatpush.bf16.msra.mxu1 %v900_v1  ;;  %v898_v5 = vld [vmem:[#allocation2 + $0x68] sm:$0xff]  ;;  %v908_v6 = vld [vmem:[%s1246_s3 + $0x38] sm:$0xff]  ;;  %v907_v7 = vld [vmem:[%s1246_s3 + $0x30] sm:$0xff]  ;;  %s651_s19 = sshll.u32 %s1256_s13, 4  ;;  %s652_s19 = int_to_ptr.hbm [resolvable:$true] %s651_s19 }
  0x10   :  { %318 = vmatpush.bf16.msra.mxu2 %v908_v6  ;;  %v889_v8 = vld [vmem:[#allocation2 + $0x20] sm:$0xff]  ;;  %v906_v10 = vld [vmem:[%s1246_s3 + $0x28] sm:$0xff]  ;;  %v888_v11 = vld [vmem:[#allocation2 + $0x18] sm:$0xff] }
  0x11   :  { %v897_v9 = vld [vmem:[#allocation2 + $0x60] sm:$0xff]  ;;  %v896_v12 = vld [vmem:[#allocation2 + $0x58] sm:$0xff]  ;;  %v887_v13 = vld [vmem:[#allocation2 + $0x10] sm:$0xff] }
  0x12   :  { %218 = vmatpush.bf16.msra.mxu0 %v891_v2  ;;  %v895_v14 = vld [vmem:[#allocation2 + $0x50] sm:$0xff]  ;;  %v886_v15 = vld [vmem:[#allocation2 + $0x8] sm:$0xff]  ;;  %v885_v17 = vld [vmem:[#allocation2] sm:$0xff] }
  0x13   :  { %231 = vmatpush.bf16.msra.mxu1 %v899_v3  ;;  %v894_v16 = vld [vmem:[#allocation2 + $0x48] sm:$0xff]  ;;  %v893_v18 = vld [vmem:[#allocation2 + $0x40] sm:$0xff]  ;;  %v904_v24 = vld [vmem:[%s1246_s3 + $0x18] sm:$0xff] }
  0x14   :  { %319 = vmatpush.bf16.msra.mxu2 %v907_v7  ;;  %v81_v19 = vld [vmem:[%s1243_s0] sm:$0xff]  ;;  %v82_v20 = vld [vmem:[%s1243_s0 + $0x8] sm:$0xff]  ;;  %v903_v25 = vld [vmem:[%s1246_s3 + $0x10] sm:$0xff] }
  0x15   :  { %v83_v21 = vpack.c.bf16 %v81_v19, %v81_v19  ;;  %v84_v22 = vpack.c.bf16 %v82_v20, %v82_v20  ;;  %v905_v23 = vld [vmem:[%s1246_s3 + $0x20] sm:$0xff]  ;;  %v902_v26 = vld [vmem:[%s1246_s3 + $0x8] sm:$0xff]  ;;  %v912_v41 = vld [vmem:[%s1248_s5 + $0x18] sm:$0xff] }
  0x16   :  { %219 = vmatpush.bf16.msra.mxu0 %v890_v4  ;;  %v901_v27 = vld [vmem:[%s1246_s3] sm:$0xff]  ;;  %382 = vmatpush.bf16.msra.mxu3 %v912_v41  ;;  %v911_v42 = vld [vmem:[%s1248_s5 + $0x10] sm:$0xff]  ;;  %v910_v43 = vld [vmem:[%s1248_s5 + $0x8] sm:$0xff] }
  0x17   :  { %232 = vmatpush.bf16.msra.mxu1 %v898_v5  ;;  %v943_v28 = vld [vmem:[%s1245_s2] ss:$0 sm:$0xff]  ;;  %v914_v45 = vld [vmem:[%s1250_s7 + $0x8] sm:$0xff]  ;;  %v918_v62 = vld [vmem:[%s1252_s9 + $0x18] sm:$0xff]  ;;  %s660_s2 = sshll.u32 %s1074_s28, 4  ;;  %s661_s2 = int_to_ptr.vmem [resolvable:$true] %s660_s2 }
  0x18   :  { %320 = vmatpush.bf16.msra.mxu2 %v906_v10  ;;  %v909_v44 = vld [vmem:[%s1248_s5] sm:$0xff]  ;;  %v917_v63 = vld [vmem:[%s1252_s9 + $0x10] sm:$0xff]  ;;  %v916_v0 = vld [vmem:[%s1252_s9 + $0x8] sm:$0xff] }
  0x19   :  { %v913_v46 = vld [vmem:[%s1250_s7] sm:$0xff]  ;;  %v879_v2 = vld [vmem:[#allocation5 + $0x70] sm:$0xf]  ;;  %v934_v3 = vld [vmem:[#allocation5 + $0x74] sm:$0xf0] }
  0x1a   :  { %220 = vmatpush.bf16.msra.mxu0 %v889_v8  ;;  %383 = vmatpush.bf16.msra.mxu3 %v911_v42  ;;  %v944_v47 = vld [vmem:[%s1247_s4] ss:$0 sm:$0xff]  ;;  %v933_v4 = vld [vmem:[#allocation5 + $0x74] sm:$0xf]  ;;  %v880_v5 = vor.u32 %v934_v3, %v879_v2  ;;  %v881_v6 = vld [vmem:[#allocation5 + $0x78] sm:$0xf0] }
  0x1b   :  { %233 = vmatpush.bf16.msra.mxu1 %v897_v9  ;;  %v945_v57 = vld [vmem:[%s1249_s6] ss:$0 sm:$0xff]  ;;  %v932_v8 = vld [vmem:[#allocation5 + $0x64] sm:$0xf0]  ;;  %v884_v9 = vor.u32 %v933_v4, %v881_v6  ;;  %v931_v10 = vld [vmem:[#allocation5 + $0x64] sm:$0xf] }
  0x1c   :  { %321 = vmatpush.bf16.msra.mxu2 %v905_v23  ;;  %v915_v1 = vld [vmem:[%s1252_s9] sm:$0xff] }
  0x1d   :  { %v871_v7 = vld [vmem:[#allocation5 + $0x60] sm:$0xf] }
  0x1e   :  { %221 = vmatpush.bf16.msra.mxu0 %v888_v11  ;;  %384 = vmatpush.bf16.msra.mxu3 %v910_v43  ;;  %v873_v11 = vld [vmem:[#allocation5 + $0x68] sm:$0xf0]  ;;  %v946_v20 = vld [vmem:[%s1251_s8] ss:$0 sm:$0xff]  ;;  %v924_v43 = vld [vmem:[#allocation5 + $0x24] sm:$0xf0] }
  0x1f   :  { %234 = vmatpush.bf16.msra.mxu1 %v896_v12  ;;  %v872_v12 = vor.u32 %v932_v8, %v871_v7  ;;  %v839_v42 = vld [vmem:[#allocation5 + $0x20] sm:$0xf] }
  0x20   :  { %322 = vmatpush.bf16.msra.mxu2 %v904_v24  ;;  %v512_v6 = vld [vmem:[%s1255_s12] sm:$0x3]  ;;  %s1075_s12 = smov [#allocation7]  }
  0x21   :  { %v514_v7 = vperm.slane %v512_v6, 0  ;;  %s649_s14 = sshll.u32 %s1075_s12, 4  ;;  %s650_s14 = int_to_ptr.vmem [resolvable:$true] %s649_s14 }
  0x22   :  { %222 = vmatpush.bf16.msra.mxu0 %v887_v13  ;;  %385 = vmatpush.bf16.msra.mxu3 %v909_v44  ;;  %v876_v13 = vor.u32 %v931_v10, %v873_v11  ;;  %v923_v44 = vld [vmem:[#allocation5 + $0x24] sm:$0xf]  ;;  %v515_v11 = vperm.slane %v512_v6, 1 }
  0x23   :  { %235 = vmatpush.bf16.msra.mxu1 %v895_v14  ;;  %v863_v14 = vld [vmem:[#allocation5 + $0x50] sm:$0xf] }
  0x24   :  { %323 = vmatpush.bf16.msra.mxu2 %v903_v25 }
  0x26   :  { %223 = vmatpush.bf16.msra.mxu0 %v886_v15  ;;  %423 = vmatpush.bf16.msrb.mxu3 %v914_v45  ;;  %v930_v15 = vld [vmem:[#allocation5 + $0x54] sm:$0xf0]  ;;  %v840_v45 = vor.u32 %v924_v43, %v839_v42 }
  0x27   :  { %236 = vmatpush.bf16.msra.mxu1 %v894_v16  ;;  %v929_v16 = vld [vmem:[#allocation5 + $0x54] sm:$0xf] }
  0x28   :  { %324 = vmatpush.bf16.msra.mxu2 %v902_v26 }
  0x2a   :  { %224 = vmatpush.bf16.msra.mxu0 %v885_v17  ;;  %424 = vmatpush.bf16.msrb.mxu3 %v913_v46  ;;  %v865_v17 = vld [vmem:[#allocation5 + $0x58] sm:$0xf0]  ;;  %v841_v46 = vld [vmem:[#allocation5 + $0x28] sm:$0xf0] }
  0x2b   :  { %237 = vmatpush.bf16.msra.mxu1 %v893_v18  ;;  %v864_v18 = vor.u32 %v930_v15, %v863_v14  ;;  %v868_v19 = vor.u32 %v929_v16, %v865_v17 }
  0x2c   :  { %325 = vmatpush.bf16.msra.mxu2 %v901_v27 }
  0x2d   :  { %225 = vmatmul.bf16.vlgmr.msra.gmra.mxu0 %v83_v21 }
  0x2e   :  { %238 = vmatmul.bf16.vlgmr.msra.gmra.mxu1 %v84_v22  ;;  %480 = vmatpush.bf16.msrb.mxu0 %v918_v62 }
  0x2f   :  { %598 = vmatpush.bf16.msrb.mxu1 %v880_v5 }
  0x30   :  { %611 = vmatpush.bf16.msrb.mxu2 %v884_v9 }
  0x32   :  { %481 = vmatpush.bf16.msrb.mxu0 %v917_v63 }
  0x33   :  { %599 = vmatpush.bf16.msrb.mxu1 %v872_v12 }
  0x34   :  { %612 = vmatpush.bf16.msrb.mxu2 %v876_v13 }
  0x36   :  { %482 = vmatpush.bf16.msrb.mxu0 %v916_v0 }
  0x37   :  { %600 = vmatpush.bf16.msrb.mxu1 %v864_v18 }
  0x38   :  { %613 = vmatpush.bf16.msrb.mxu2 %v868_v19 }
  0x3a   :  { %483 = vmatpush.bf16.msrb.mxu0 %v915_v1 }
  0xaa   :  { %v226_v29 = vpop.f32.mrf.mxu0 }
  0xab   :  { %v239_v30 = vpop.f32.mrf.mxu1  ;;  %v227_v31 = vadd.f32 %v943_v28, %v226_v29 }
  0xad   :  { %v240_v32 = vadd.f32 %v239_v30, %v227_v31  ;;  %v855_v30 = vld [vmem:[#allocation5 + $0x40] sm:$0xf]  ;;  %v928_v31 = vld [vmem:[#allocation5 + $0x44] sm:$0xf0] }
  0xaf   :  { %v244_v33 = vmin.f32 %v240_v32, 0.0  ;;  %vm243_vm0 = vcmp.gt.f32.partialorder %v240_v32, 0.0 }
  0xb1   :  { %v245_v34 = vmul.f32 1.442695, %v244_v33  ;;  %v856_v33 = vor.u32 %v928_v31, %v855_v30 }
  0xb2   :  { %v228_v35 = vpop.f32.mrf.mxu0 }
  0xb3   :  { %v241_v36 = vpop.f32.mrf.mxu1  ;;  %948 = vpow2.f32 %v245_v34  ;;  %v857_v34 = vld [vmem:[#allocation5 + $0x48] sm:$0xf0]  ;;  %601 = vmatpush.bf16.msrb.mxu1 %v856_v33 }
  0xb4   :  { %v847_v36 = vld [vmem:[#allocation5 + $0x30] sm:$0xf] }
  0xb9   :  { %v949_v37 = vpop.eup %948 }
  0xba   :  { %v742_v38 = vadd.f32 -1.0, %v949_v37  ;;  %v926_v37 = vld [vmem:[#allocation5 + $0x34] sm:$0xf0] }
  0xbc   :  { %v248_v39 = vsel %vm243_vm0, %v240_v32, %v742_v38  ;;  %v927_v32 = vld [vmem:[#allocation5 + $0x44] sm:$0xf]  ;;  %v925_v38 = vld [vmem:[#allocation5 + $0x34] sm:$0xf] }
  0xbd   :  { %v249_v40 = vpack.c.bf16 %v248_v39, %v248_v39  ;;  %v860_v35 = vor.u32 %v927_v32, %v857_v34  ;;  %v848_v39 = vor.u32 %v926_v37, %v847_v36 }
  0xbf   :  { %326 = vmatmul.bf16.vlgmr.msra.gmra.mxu2 %v249_v40  ;;  %v849_v40 = vld [vmem:[#allocation5 + $0x38] sm:$0xf0]  ;;  %602 = vmatpush.bf16.msrb.mxu1 %v848_v39 }
  0xc0   :  { %614 = vmatpush.bf16.msrb.mxu2 %v860_v35  ;;  %v852_v41 = vor.u32 %v925_v38, %v849_v40 }
  0xc3   :  { %603 = vmatpush.bf16.msrb.mxu1 %v840_v45 }
  0xc4   :  { %615 = vmatpush.bf16.msrb.mxu2 %v852_v41 }
 0x142   :  { %v327_v48 = vpop.f32.mrf.mxu2 }
 0x143   :  { %v328_v49 = vadd.f32 %v944_v47, %v327_v48  ;;  %v844_v47 = vor.u32 %v923_v44, %v841_v46  ;;  %v831_v48 = vld [vmem:[#allocation5 + $0x10] sm:$0xf] }
 0x145   :  { %v332_v50 = vmin.f32 %v328_v49, 0.0  ;;  %vm331_vm1 = vcmp.gt.f32.partialorder %v328_v49, 0.0  ;;  %616 = vmatpush.bf16.msrb.mxu2 %v844_v47 }
 0x147   :  { %v333_v51 = vmul.f32 1.442695, %v332_v50  ;;  %v921_v50 = vld [vmem:[#allocation5 + $0x14] sm:$0xf] }
 0x149   :  { %950 = vpow2.f32 %v333_v51 }
 0x14a   :  { %v329_v52 = vpop.f32.mrf.mxu2 }
 0x14b   :  { %v833_v52 = vld [vmem:[#allocation5 + $0x18] sm:$0xf0] }
 0x14f   :  { %v951_v53 = vpop.eup %950 }
 0x150   :  { %v775_v54 = vadd.f32 -1.0, %v951_v53  ;;  %v836_v53 = vor.u32 %v921_v50, %v833_v52 }
 0x152   :  { %v336_v55 = vsel %vm331_vm1, %v328_v49, %v775_v54  ;;  %v922_v49 = vld [vmem:[#allocation5 + $0x14] sm:$0xf0]  ;;  %617 = vmatpush.bf16.msrb.mxu2 %v836_v53  ;;  %v823_v54 = vld [vmem:[#allocation5] sm:$0xf] }
 0x153   :  { %v337_v56 = vpack.c.bf16 %v336_v55, %v336_v55  ;;  %v832_v51 = vor.u32 %v922_v49, %v831_v48  ;;  %v920_v55 = vld [vmem:[#allocation5 + $0x4] sm:$0xf0] }
 0x155   :  { %792 = vmatmul.msk.bf16.vlgmr.msra.gmra.mxu3 %vm374_vm2, %v337_v56  ;;  %604 = vmatpush.bf16.msrb.mxu1 %v832_v51  ;;  %v919_v56 = vld [vmem:[#allocation5 + $0x4] sm:$0xf] }
 0x1d8   :  { %v387_v58 = vpop.f32.mrf.mxu3 }
 0x1d9   :  { %v388_v59 = vadd.f32 %v945_v57, %v387_v58  ;;  %v824_v57 = vor.u32 %v920_v55, %v823_v54  ;;  %v825_v58 = vld [vmem:[#allocation5 + $0x8] sm:$0xf0] }
 0x1db   :  { %v393_v60 = vpack.c.bf16 %v388_v59, %v388_v59  ;;  %392 = vst.msk [vmem:[#allocation8] sm:$0xff] %vm391_vm3, %v388_v59  ;;  %v828_v59 = vor.u32 %v919_v56, %v825_v58  ;;  %605 = vmatpush.bf16.msrb.mxu1 %v824_v57 }
 0x1dc   :  { %665 = dma.vmem_to_hbm [thread:$0]  %s661_s2, 128, %s663_s15, [#allocation9]  }
 0x1dd   :  { %801 = vmatmul.msk.bf16.vlgmr.msrb.gmra.mxu3 %vm391_vm3, %v393_v60  ;;  %618 = vmatpush.bf16.msrb.mxu2 %v828_v59  ;;  %v947_v60 = vld [vmem:[%s1253_s10] ss:$0 sm:$0xff] }
 0x1e0   :  { %v389_v61 = vpop.f32.mrf.mxu3 }
 0x260   :  { %v426_v21 = vpop.f32.mrf.mxu3 }
 0x261   :  { %v427_v22 = vadd.f32 %v946_v20, %v426_v21 }
 0x263   :  { %v431_v23 = vmin.f32 %v427_v22, 0.0  ;;  %vm430_vm4 = vcmp.gt.f32.partialorder %v427_v22, 0.0 }
 0x265   :  { %v432_v24 = vmul.f32 1.442695, %v431_v23 }
 0x267   :  { %952 = vpow2.f32 %v432_v24 }
 0x268   :  { %v428_v25 = vpop.f32.mrf.mxu3 }
 0x26d   :  { %v953_v26 = vpop.eup %952 }
 0x26e   :  { %v802_v27 = vadd.f32 -1.0, %v953_v26 }
 0x270   :  { %v435_v28 = vsel %vm430_vm4, %v427_v22, %v802_v27 }
 0x271   :  { %v436_v29 = vpack.c.bf16 %v435_v28, %v435_v28 }
 0x273   :  { %819 = vmatmul.msk.bf16.vlgmr.msrb.gmra.mxu0 %vm374_vm2, %v436_v29 }
 0x2f0   :  { %v485_v61 = vpop.f32.mrf.mxu0 }
 0x2f1   :  { %v486_v62 = vadd.f32 %v947_v60, %v485_v61 }
 0x2f3   :  { %v490_v63 = vmin.f32 %v486_v62, 0.0  ;;  %vm489_vm5 = vcmp.gt.f32.partialorder %v486_v62, 0.0 }
 0x2f5   :  { %v491_v0 = vmul.f32 1.442695, %v490_v63 }
 0x2f7   :  { %954 = vpow2.f32 %v491_v0 }
 0x2f8   :  { %v487_v1 = vpop.f32.mrf.mxu0 }
 0x2fd   :  { %v955_v2 = vpop.eup %954 }
 0x2fe   :  { %v820_v3 = vadd.f32 -1.0, %v955_v2 }
 0x300   :  { %v494_v4 = vsel %vm489_vm5, %v486_v62, %v820_v3 }
 0x301   :  { %v495_v5 = vpack.c.bf16 %v494_v4, %v494_v4 }
 0x303   :  { %606 = vmatmul.bf16.vlgmr.msrb.gmra.mxu1 %v495_v5  ;;  %619 = vmatmul.bf16.vlgmr.msrb.gmra.mxu2 %v495_v5 }
 0x380   :  { %v607_v8 = vpop.f32.mrf.mxu1 }
 0x381   :  { %v608_v9 = vadd.f32 %v607_v8, %v514_v7 }
 0x383   :  { %v624_v10 = vand.u32 2147483647, %v608_v9  ;;  %vm636_vm6 = vcmp.ge.f32.partialorder %v608_v9, 0.0 }
 0x385   :  { %v626_v12 = vsub.f32 0.0, %v624_v10 }
 0x386   :  { %v620_v13 = vpop.f32.mrf.mxu2 }
 0x387   :  { %v628_v14 = vmul.f32 1.442695, %v626_v12  ;;  %v621_v15 = vadd.f32 %v620_v13, %v515_v11 }
 0x388   :  { %v609_v16 = vpop.f32.mrf.mxu1 }
 0x389   :  { %956 = vpow2.f32 %v628_v14  ;;  %v625_v17 = vand.u32 2147483647, %v621_v15  ;;  %vm637_vm7 = vcmp.ge.f32.partialorder %v621_v15, 0.0 }
 0x38b   :  { %v627_v18 = vsub.f32 0.0, %v625_v17 }
 0x38d   :  { %v630_v19 = vmul.f32 1.442695, %v627_v18 }
 0x38e   :  { %v622_v20 = vpop.f32.mrf.mxu2 }
 0x38f   :  { %v957_v21 = vpop.eup %956  ;;  %958 = vpow2.f32 %v630_v19 }
 0x390   :  { %v632_v22 = vadd.f32 1.0, %v957_v21 }
 0x392   :  { %960 = vrcp.f32 %v632_v22 }
 0x395   :  { %v959_v23 = vpop.eup %958 }
 0x396   :  { %v633_v24 = vadd.f32 1.0, %v959_v23 }
 0x398   :  { %962 = vrcp.f32 %v633_v24  ;;  %v961_v25 = vpop.eup %960 }
 0x399   :  { %v638_v26 = vmul.f32 %v961_v25, %v957_v21 }
 0x39b   :  { %v640_v29 = vsel %vm636_vm6, %v961_v25, %v638_v26 }
 0x39e   :  { %v963_v27 = vpop.eup %962 }
 0x39f   :  { %v639_v28 = vmul.f32 %v963_v27, %v959_v23 }
 0x3a1   :  { %v641_v30 = vsel %vm637_vm7, %v963_v27, %v639_v28 }
 0x3a2   :  { %v642_v31 = vpack.c.bf16 %v641_v30, %v640_v29 }
 0x3a4   :  { %643 = vst [vmem:[#allocation7] sm:$0xff] %v642_v31 }
 0x3a5   :  { %654 = dma.vmem_to_hbm [thread:$0]  %s650_s14, 128, %s652_s19, [#allocation4]  }
 0x3a6   :  { %1064 = dma.done.wait [#allocation4], 128  }
 0x3a7   :  { %1065 = vsyncadd [#allocation4], 4294967168 }
 0x3a8   :  { %1066 = dma.done.wait [#allocation9], 128  }
 0x3a9   :  { %1067 = vsyncadd [#allocation9], 4294967168 }
 0x3aa   :  { %674 = vsyncpa [#allocation3], 1 }
 0x3ab   :  { %675 = vsyncpa [#allocation6], 1 }
 0x3ac   :  { %676 = vsyncpa [#allocation4], 1 }
 0x3ad   :  { %677 = vsyncpa [#allocation9], 1 }

</bundles_post_ra>
